<compile_context>
chip_gen: v7x
topology: tpu7x:2x2x1
jax: 0.10.0
libtpu: 0.0.40
codegen_flags: <defaults>
</compile_context>

<pallas_src>
import jax
import jax.numpy as jnp
from jax.experimental import pallas as pl
from jax.experimental.pallas import tpu as pltpu


_TARGET_BLOCK_BYTES = 4 * 1024 * 1024   # ~4 MiB per block amortizes grid-step cost
_SMALL_INPUT_BYTES = 1 << 20            # below this, the bare reshape always wins


def _copy_kernel(x_ref, o_ref):
    # Straight tile copy; the flatten reshape already happened in the wrapper.
    o_ref[...] = x_ref[...]


def _cdiv(a: int, b: int) -> int:
    return -(-a // b)


def _sublane_align(dtype) -> int:
    """Packed sublane count: 8 for 32-bit, 16 for 16-bit, 32 for 8-bit dtypes."""
    itemsize = jnp.dtype(dtype).itemsize
    if itemsize >= 4:
        return 8
    if itemsize == 2:
        return 16
    return 32


def _vmem_capacity_bytes() -> int:
    try:
        return int(pltpu.get_tpu_info().vmem_capacity_bytes)
    except Exception:
        return 64 << 20   # conservative fallback: v7x per-TensorCore VMEM


def _choose_tiles(n: int, flat: int, dtype) -> tuple:
    """Pick (tb, tf) block extents for the (n, flat) copy."""
    itemsize = jnp.dtype(dtype).itemsize
    align_b = _sublane_align(dtype)
    vmem_cap = _vmem_capacity_bytes()
    # 2 arrays (in + out) x 2 pipeline buffers each, with headroom.
    block_bytes = min(_TARGET_BLOCK_BYTES, max(vmem_cap // 8, 1 << 20))

    row_bytes = max(flat * itemsize, 1)
    if row_bytes <= block_bytes:
        # Full flat extent per block: one contiguous row-major DMA per block,
        # no masked lane-tail stores, 1-D grid over batch.
        tf = flat
        tb_cap = max(1, block_bytes // row_bytes)
        if n <= tb_cap:
            tb = n
        else:
            tb = min(n, max(align_b, (tb_cap // align_b) * align_b))
        # v7x: make sure a *large* copy has >= 2 "parallel" blocks so both
        # TensorCores participate.
        if tb == n and n >= 2 * align_b and n * row_bytes > (2 << 20):
            half = _cdiv(n, 2)
            tb = min(n, _cdiv(half, align_b) * align_b)
        return tb, tf

    # A single flat row does not fit one block: tile the lane axis.
    tb = n if n < align_b else align_b
    tf_cap = max(128, ((block_bytes // (tb * itemsize)) // 128) * 128)
    tf = tf_cap
    # Prefer the largest 128-multiple that divides flat exactly (keeps every
    # output store unmasked / lane-dense).
    for cand in range(tf_cap, 127, -128):
        if flat % cand == 0:
            tf = cand
            break
    return tb, tf


def flatten(x: jax.Array, *, force_pallas: bool = False) -> jax.Array:
    """Pallas equivalent of `x.view(x.size(0), -1)`."""
    n = x.shape[0]
    flat = 1
    for d in x.shape[1:]:
        flat *= d
    itemsize = jnp.dtype(x.dtype).itemsize

    # Metadata-only reshape (free in XLA) -- this already *is* the flatten.
    x2 = x.reshape(n, flat)

    # For small tensors the pallas_call launch overhead dominates and a copy
    # cannot possibly help; return the reshape directly.
    if not force_pallas and n * flat * itemsize < _SMALL_INPUT_BYTES:
        return x2

    tb, tf = _choose_tiles(n, flat, x.dtype)

    if tf == flat:
        grid = (_cdiv(n, tb),)
        in_spec = pl.BlockSpec((tb, flat), lambda i: (i, 0))
        out_spec = pl.BlockSpec((tb, flat), lambda i: (i, 0))
        dims = ("parallel",)
    else:
        grid = (_cdiv(n, tb), _cdiv(flat, tf))
        in_spec = pl.BlockSpec((tb, tf), lambda i, j: (i, j))
        out_spec = pl.BlockSpec((tb, tf), lambda i, j: (i, j))
        dims = ("parallel", "parallel")

    block_bytes = tb * tf * itemsize
    vmem_limit = int(min(_vmem_capacity_bytes(), max(6 * block_bytes, 32 << 20)))

    return pl.pallas_call(
        _copy_kernel,
        out_shape=jax.ShapeDtypeStruct((n, flat), x.dtype),
        grid=grid,
        in_specs=[in_spec],
        out_specs=out_spec,
        compiler_params=pltpu.CompilerParams(
            dimension_semantics=dims,
            vmem_limit_bytes=vmem_limit,
        ),
        cost_estimate=pl.CostEstimate(
            flops=0,
            transcendentals=0,
            bytes_accessed=2 * n * flat * itemsize,
        ),
    )(x2)


if __name__ == "__main__":
    key = jax.random.PRNGKey(0)
    # Small NCHW input consistent with the module's intended use after a conv stack.
    x = jax.random.normal(key, (2, 4, 16, 16), dtype=jnp.float32)
    y_ref = x.reshape(x.shape[0], -1)

    # Default path: metadata-only reshape (no HBM round trip) for tiny inputs.
    y_fast = flatten(x)
    jax.block_until_ready(y_fast)
    assert y_fast.shape == (2, 4 * 16 * 16), y_fast.shape
    assert jnp.array_equal(y_fast, y_ref), "fast-path flatten mismatch vs reference"

    # Pallas kernel path, exercised explicitly once.
    y = flatten(x, force_pallas=True)
    jax.block_until_ready(y)
    assert y.shape == (2, 4 * 16 * 16), y.shape
    assert y.dtype == x.dtype
    assert jnp.array_equal(y, y_ref), "Pallas flatten mismatch vs reference"

    print("KERNEL_OK")
</pallas_src>

<mosaic_0001>
module attributes {stable_mosaic.version = 11 : i64} {
  func.func @_copy_kernel(%arg0: i32, %arg1: memref<2x1024xf32, #tpu.memory_space<vmem>>, %arg2: memref<2x1024xf32, #tpu.memory_space<vmem>>) attributes {dimension_semantics = [#tpu.dimension_semantics<parallel>], iteration_bounds = array<i64: 1>, scalar_prefetch = 0 : i64, scratch_operands = 0 : i64, tpu.core_type = #tpu.core_type<tc>, window_params = [{transform_indices = @transform_0, window_bounds = array<i64: 2, 1024>}, {transform_indices = @transform_1, window_bounds = array<i64: 2, 1024>}]} {
    %c0 = arith.constant 0 : index
    %c0_0 = arith.constant 0 : index
    %0 = vector.load %arg1[%c0, %c0_0] : memref<2x1024xf32, #tpu.memory_space<vmem>>, vector<2x1024xf32>
    %c0_1 = arith.constant 0 : index
    %c0_2 = arith.constant 0 : index
    %1 = vector.load %arg2[%c0_1, %c0_2] : memref<2x1024xf32, #tpu.memory_space<vmem>>, vector<2x1024xf32>
    tpu.vector_store %arg2[%c0_1, %c0_2], %0 {strides = array<i32>} : memref<2x1024xf32, #tpu.memory_space<vmem>>, vector<2x1024xf32>,
    return
  }
  func.func @transform_0(%arg0: i32) -> (i32, i32) {
    %c0_i32 = arith.constant 0 : i32
    %c0_i32_0 = arith.constant 0 : i32
    return %arg0, %c0_i32 : i32, i32
  }
  func.func @transform_1(%arg0: i32) -> (i32, i32) {
    %c0_i32 = arith.constant 0 : i32
    %c0_i32_0 = arith.constant 0 : i32
    return %arg0, %c0_i32 : i32, i32
  }
}

</mosaic_0001>

<bundles_post_ra>
// kernel: tpu_custom_call.1
= control target key start
LH: loop header
LB: loop body
LE: loop exit
PB: predicated region body
PF: predicated region fallthrough
CT: control target
= control target key end

     0   :  { %6 = vsyncpa [#allocation3], 0  ;;  %s126_s0 = inlined_call_operand.hbm [shape: f32[2,1024], index: 0, kind: input, shape index: {}]   ;;  %s127_s1 = inlined_call_operand.hbm [shape: f32[2,1024], index: 1, kind: output, shape index: {}]  }
   0x1   :  { %7 = vsyncpa [#allocation4], 0  ;;  %s90_s6 = smov [#allocation2]   ;;  %s42_s10 = scalar_lea.hbm %s126_s0, 256 }
   0x2   :  { %s14_s7 = sshll.u32 %s90_s6, 4  ;;  %p43_p0 = scmp.ne.s32.totalorder %s126_s0, %s42_s10  ;;  %s15_s7 = int_to_ptr.vmem [resolvable:$true] %s14_s7 }
   0x3   :  { %p46_p1 = scmp.lt.u32.totalorder %s42_s10, %s126_s0 }
   0x5   :  { %p48_p2 = pnand %p46_p1, %p43_p0 }
   0x7   :  { %51 = shalt.err (!%p48_p2)
}
   0x8   :  { %s52_s15 = scalar_lea.vmem %s15_s7, 256  ;;  %p57_p4 = scmp.lt.s32.totalorder %s15_s7, %s15_s7 }
   0x9   :  { %p53_p3 = scmp.ne.s32.totalorder %s15_s7, %s52_s15  ;;  %p58_p5 = scmp.lt.s32.totalorder %s52_s15, %s52_s15 }
   0xb   :  { %p59_p6 = por %p58_p5, %p57_p4 }
   0xd   :  { %p60_p7 = pnand %p59_p6, %p53_p3 }
   0xf   :  { %63 = shalt.err (!%p60_p7)
}
  0x10   :  { %17 = dma.hbm_to_vmem [thread:$0]  %s126_s0, 256, %s15_s7, [#allocation3]  }
  0x11   :  { %86 = dma.done.wait [#allocation3], 256  }
  0x12   :  { %87 = vsyncadd [#allocation3], 4294967040  ;;  %s91_s18 = smov [#allocation5]   ;;  %v21_v0 = vld [vmem:[#allocation2] sm:$0xff]  ;;  %v22_v1 = vld [vmem:[#allocation2 + $0x8] sm:$0xff] }
  0x13   :  { %s31_s19 = sshll.u32 %s91_s18, 4  ;;  %23 = vst [vmem:[#allocation5] sm:$0xff] %v21_v0  ;;  %24 = vst [vmem:[#allocation5 + $0x8] sm:$0xff] %v22_v1  ;;  %s32_s19 = int_to_ptr.vmem [resolvable:$true] %s31_s19 }
  0x14   :  { %s64_s20 = scalar_lea.vmem %s32_s19, 256  ;;  %p69_p9 = scmp.lt.s32.totalorder %s32_s19, %s32_s19 }
  0x15   :  { %p65_p8 = scmp.ne.s32.totalorder %s32_s19, %s64_s20  ;;  %p70_p10 = scmp.lt.s32.totalorder %s64_s20, %s64_s20 }
  0x17   :  { %p71_p11 = por %p70_p10, %p69_p9 }
  0x19   :  { %p72_p12 = pnand %p71_p11, %p65_p8 }
  0x1b   :  { %75 = shalt.err (!%p72_p12)
}
  0x1c   :  { %s76_s0 = scalar_lea.hbm %s127_s1, 256 }
  0x1d   :  { %p77_p13 = scmp.ne.s32.totalorder %s127_s1, %s76_s0  ;;  %p80_p0 = scmp.lt.u32.totalorder %s76_s0, %s127_s1 }
  0x1f   :  { %p82_p1 = pnand %p80_p0, %p77_p13 }
  0x21   :  { %85 = shalt.err (!%p82_p1)
}
  0x22   :  { %34 = dma.vmem_to_hbm [thread:$0]  %s32_s19, 256, %s127_s1, [#allocation4]  }
  0x23   :  { %88 = dma.done.wait [#allocation4], 256  }
  0x24   :  { %89 = vsyncadd [#allocation4], 4294967040 }
  0x25   :  { %38 = vsyncpa [#allocation3], 1 }
  0x26   :  { %39 = vsyncpa [#allocation4], 1 }

</bundles_post_ra>
